<compile_context>
chip_gen: v7x
topology: tpu7x:2x2x1
jax: 0.10.0
libtpu: 0.0.40
codegen_flags: <defaults>
</compile_context>

<pallas_src>
import jax
import jax.numpy as jnp
from jax.experimental import pallas as pl
from jax.experimental.pallas import tpu as pltpu

_LANE = 128                       # hidden feature dims padded to the 128-lane width
_OUT_PAD = 8                      # Q-value dim padded only to 8 lanes (2 -> 8)
_H1, _H2, _OUT = 60, 40, 2
_VMEM_BUDGET = 12 * 1024 * 1024   # keeps us under v5e's 16 MiB default scoped VMEM


def _round_up(x, m):
    return (x + m - 1) // m * m


def _dqn_kernel(x_ref, w1_ref, b1_ref, w2_ref, b2_ref, w3_ref, b3_ref, o_ref):
    # x tile arrives in its HBM storage dtype (f32 or bf16) and is cast to the
    # MXU input dtype in VMEM.  Accumulation + bias/ReLU epilogue are f32.
    x = x_ref[...].astype(w1_ref.dtype)

    h1 = jnp.dot(x, w1_ref[...], preferred_element_type=jnp.float32) + b1_ref[...]
    h1 = jnp.maximum(h1, 0.0).astype(w2_ref.dtype)

    h2 = jnp.dot(h1, w2_ref[...], preferred_element_type=jnp.float32) + b2_ref[...]
    h2 = jnp.maximum(h2, 0.0).astype(w3_ref.dtype)

    out = jnp.dot(h2, w3_ref[...], preferred_element_type=jnp.float32) + b3_ref[...]
    o_ref[...] = out.astype(o_ref.dtype)


def init_params(img_height, img_width, key):
    """Deterministic init matching the nn.Linear shapes of the DQN module.

    Weights stored as (in_features, out_features) (torch weight.T), biases as
    (1, out_features)."""
    d_in = img_height * img_width * 3
    dims = [(d_in, _H1), (_H1, _H2), (_H2, _OUT)]
    params = []
    for fan_in, fan_out in dims:
        kw, kb, key = jax.random.split(key, 3)
        bound = 1.0 / (fan_in ** 0.5)   # torch's default nn.Linear init bound
        w = jax.random.uniform(kw, (fan_in, fan_out), jnp.float32, -bound, bound)
        b = jax.random.uniform(kb, (1, fan_out), jnp.float32, -bound, bound)
        params.extend([w, b])
    return tuple(params)


def prepare_params(params, param_dtype=jnp.bfloat16):
    """One-time preparation (do NOT call per step): zero-pad feature dims to
    lane width and cast weights to the MXU input dtype.  Biases stay f32 so the
    bias-add / ReLU epilogue runs in f32."""
    w1, b1, w2, b2, w3, b3 = params
    d_in = w1.shape[0]

    def pad(a, rows, cols, dtype):
        out = jnp.zeros((rows, cols), jnp.float32)
        out = out.at[: a.shape[0], : a.shape[1]].set(a.astype(jnp.float32))
        return out.astype(dtype)

    return (
        pad(w1, d_in, _LANE, param_dtype),
        pad(b1, 1, _LANE, jnp.float32),
        pad(w2, _LANE, _LANE, param_dtype),
        pad(b2, 1, _LANE, jnp.float32),
        pad(w3, _LANE, _OUT_PAD, param_dtype),
        pad(b3, 1, _OUT_PAD, jnp.float32),
    )


def _pick_tile_b(B, d_in, x_itemsize, w_itemsize, vmem_budget):
    # Resident bytes: weights + biases (x2: the default pipeline still
    # double-buffers constant-index inputs).
    # TODO(synk): pipeline_mode=pl.Buffered(1) on the weight specs would halve
    # this; omitted for portability across Pallas versions.
    resident = 2 * (
        (d_in * _LANE + _LANE * _LANE + _LANE * _OUT_PAD) * w_itemsize
        + (2 * _LANE + _OUT_PAD) * 4
    )
    # Streamed bytes per batch row: double-buffered x tile + double-buffered
    # 8-lane f32 output tile.
    per_row = 2 * (d_in * x_itemsize + _OUT_PAD * 4)
    avail = vmem_budget - resident
    if avail < 16 * per_row:
        # TODO(synk): for very large d_in (e.g. 84*84*3) w1 no longer fits
        # resident in VMEM; add a K grid axis over d_in chunks for layer 1.
        return 16
    tile = min(avail // per_row, 4096)          # diminishing returns past ~4K rows
    # Keep >= 2 grid steps when B allows, so ("parallel",) shards the batch
    # across both TensorCores on v7x (no-op on single-TC v5e/v6e).
    tile = min(tile, _round_up((B + 1) // 2, 16))
    return max(16, int(tile // 16) * 16)


def dqn_forward(x_nchw, prepared_params, *, tile_b=None, vmem_budget=_VMEM_BUDGET):
    """x_nchw: (B, 3, H, W) in its HBM storage dtype (cast upstream if bf16 is
    wanted — this wrapper never copies x).  Returns (B, 2) float32 Q-values."""
    w1, b1, w2, b2, w3, b3 = prepared_params
    d_in = w1.shape[0]

    B = x_nchw.shape[0]
    x_flat = x_nchw.reshape(B, -1)    # contiguous reshape: no HBM copy
    assert x_flat.shape[1] == d_in

    if tile_b is None:
        tile_b = _pick_tile_b(B, d_in, x_flat.dtype.itemsize,
                              jnp.dtype(w1.dtype).itemsize, vmem_budget)
    assert tile_b % 8 == 0
    grid_b = pl.cdiv(B, tile_b)       # ragged last tile: OOB rows are garbage,
                                      # masked out of the (B, 8) store

    w_bytes = sum(int(a.size) * a.dtype.itemsize for a in prepared_params)
    cost = pl.CostEstimate(
        flops=2 * B * (d_in * _LANE + _LANE * _LANE + _LANE * _OUT_PAD),
        transcendentals=0,
        bytes_accessed=B * d_in * x_flat.dtype.itemsize + B * _OUT_PAD * 4 + w_bytes,
    )

    out = pl.pallas_call(
        _dqn_kernel,
        out_shape=jax.ShapeDtypeStruct((B, _OUT_PAD), jnp.float32),
        grid=(grid_b,),
        in_specs=[
            pl.BlockSpec((tile_b, d_in), lambda i: (i, 0)),     # x: streamed per tile
            pl.BlockSpec((d_in, _LANE), lambda i: (0, 0)),      # w1: VMEM-resident
            pl.BlockSpec((1, _LANE), lambda i: (0, 0)),         # b1
            pl.BlockSpec((_LANE, _LANE), lambda i: (0, 0)),     # w2
            pl.BlockSpec((1, _LANE), lambda i: (0, 0)),         # b2
            pl.BlockSpec((_LANE, _OUT_PAD), lambda i: (0, 0)),  # w3 (128 -> 8 lanes)
            pl.BlockSpec((1, _OUT_PAD), lambda i: (0, 0)),      # b3
        ],
        out_specs=pl.BlockSpec((tile_b, _OUT_PAD), lambda i: (i, 0)),
        compiler_params=pltpu.CompilerParams(
            dimension_semantics=("parallel",),
            # tile budget keeps total VMEM < 12 MiB, so the default scoped
            # limits (16/32/32 MiB on v5e/v6e/v7x) are never the failure mode.
        ),
        cost_estimate=cost,
    )(x_flat, w1, b1, w2, b2, w3, b3)

    return out[:, :_OUT]   # drop the 6 padded Q-value lanes


def _reference(x_nchw, params, param_dtype=jnp.float32):
    """Pure-JAX reference matching the kernel's storage/precision policy."""
    w1, b1, w2, b2, w3, b3 = params
    xf = x_nchw.reshape(x_nchw.shape[0], -1).astype(jnp.float32)

    def q(a):  # simulate the MXU-input rounding of weights / activations
        return a.astype(param_dtype).astype(jnp.float32)

    h1 = jnp.maximum(q(xf) @ q(w1) + b1, 0.0)
    h2 = jnp.maximum(q(h1) @ q(w2) + b2, 0.0)
    return q(h2) @ q(w3) + b3


if __name__ == "__main__":
    key = jax.random.PRNGKey(0)
    k_x, k_x2, k_p = jax.random.split(key, 3)

    B, C, H, W = 2, 3, 16, 16
    params = init_params(H, W, k_p)

    # f32 storage path (matches the PyTorch module up to the TPU MXU's
    # multi-pass bf16 emulation of f32 matmuls).
    x = jax.random.uniform(k_x, (B, C, H, W), jnp.float32)
    p_f32 = prepare_params(params, jnp.float32)
    q_f32 = dqn_forward(x, p_f32)
    jax.block_until_ready(q_f32)
    assert q_f32.shape == (B, _OUT)
    assert jnp.allclose(q_f32, _reference(x, params, jnp.float32), atol=1e-4, rtol=1e-4)

    # Default bf16 path: x produced upstream in bf16 (no wrapper cast), weights
    # prepared once.  tile_b=16 forces a multi-step grid with a ragged last tile.
    B2 = 20
    x2 = jax.random.uniform(k_x2, (B2, C, H, W), jnp.float32).astype(jnp.bfloat16)
    p_bf16 = prepare_params(params)                 # bf16 default
    ref_bf16 = _reference(x2, params, jnp.bfloat16)

    q_bf16 = dqn_forward(x2, p_bf16, tile_b=16)     # 2 grid steps, last tile ragged
    jax.block_until_ready(q_bf16)
    assert q_bf16.shape == (B2, _OUT)
    assert jnp.allclose(q_bf16, ref_bf16, atol=2e-3, rtol=2e-3)

    # Budget-derived tile_b path (auto tile sizing + >=2-step grid heuristic).
    q_auto = dqn_forward(x2, p_bf16)
    jax.block_until_ready(q_auto)
    assert jnp.allclose(q_auto, ref_bf16, atol=2e-3, rtol=2e-3)

    print("KERNEL_OK")
</pallas_src>

<mosaic_0001>
module attributes {stable_mosaic.version = 11 : i64} {
  func.func @_dqn_kernel(%arg0: i32, %arg1: memref<16x768xf32, #tpu.memory_space<vmem>>, %arg2: memref<768x128xf32, #tpu.memory_space<vmem>>, %arg3: memref<1x128xf32, #tpu.memory_space<vmem>>, %arg4: memref<128x128xf32, #tpu.memory_space<vmem>>, %arg5: memref<1x128xf32, #tpu.memory_space<vmem>>, %arg6: memref<128x8xf32, #tpu.memory_space<vmem>>, %arg7: memref<1x8xf32, #tpu.memory_space<vmem>>, %arg8: memref<16x8xf32, #tpu.memory_space<vmem>>) attributes {dimension_semantics = [#tpu.dimension_semantics<parallel>], iteration_bounds = array<i64: 1>, scalar_prefetch = 0 : i64, scratch_operands = 0 : i64, tpu.core_type = #tpu.core_type<tc>, window_params = [{transform_indices = @transform_0, window_bounds = array<i64: 16, 768>}, {pipeline_mode = #tpu.pipeline_mode<synchronous>, transform_indices = @transform_1, window_bounds = array<i64: 768, 128>}, {pipeline_mode = #tpu.pipeline_mode<synchronous>, transform_indices = @transform_2, window_bounds = array<i64: 1, 128>}, {pipeline_mode = #tpu.pipeline_mode<synchronous>, transform_indices = @transform_3, window_bounds = array<i64: 128, 128>}, {pipeline_mode = #tpu.pipeline_mode<synchronous>, transform_indices = @transform_4, window_bounds = array<i64: 1, 128>}, {pipeline_mode = #tpu.pipeline_mode<synchronous>, transform_indices = @transform_5, window_bounds = array<i64: 128, 8>}, {pipeline_mode = #tpu.pipeline_mode<synchronous>, transform_indices = @transform_6, window_bounds = array<i64: 1, 8>}, {transform_indices = @transform_7, window_bounds = array<i64: 16, 8>}]} {
    %c0 = arith.constant 0 : index
    %c0_0 = arith.constant 0 : index
    %0 = vector.load %arg1[%c0, %c0_0] : memref<16x768xf32, #tpu.memory_space<vmem>>, vector<16x768xf32>
    %c0_1 = arith.constant 0 : index
    %c0_2 = arith.constant 0 : index
    %1 = vector.load %arg2[%c0_1, %c0_2] : memref<768x128xf32, #tpu.memory_space<vmem>>, vector<768x128xf32>
    %cst = arith.constant dense<0.000000e+00> : vector<16x128xf32>
    %2 = tpu.matmul %0, %1, %cst {dimension_numbers = #tpu.dot_dimension_numbers<[1], [0], [0], [1], [0, 0, 1, 1], [], []>} : vector<16x768xf32>, vector<768x128xf32>, vector<16x128xf32> -> vector<16x128xf32>
    %c0_3 = arith.constant 0 : index
    %c0_4 = arith.constant 0 : index
    %3 = vector.load %arg3[%c0_3, %c0_4] : memref<1x128xf32, #tpu.memory_space<vmem>>, vector<1x128xf32>
    %4 = vector.broadcast %3 : vector<1x128xf32> to vector<16x128xf32>
    %5 = arith.addf %2, %4 : vector<16x128xf32>
    %cst_5 = arith.constant 0.000000e+00 : f32
    %6 = vector.broadcast %cst_5 : f32 to vector<16x128xf32>
    %7 = arith.maximumf %5, %6 : vector<16x128xf32>
    %c0_6 = arith.constant 0 : index
    %c0_7 = arith.constant 0 : index
    %8 = vector.load %arg4[%c0_6, %c0_7] : memref<128x128xf32, #tpu.memory_space<vmem>>, vector<128x128xf32>
    %cst_8 = arith.constant dense<0.000000e+00> : vector<16x128xf32>
    %9 = tpu.matmul %7, %8, %cst_8 {dimension_numbers = #tpu.dot_dimension_numbers<[1], [0], [0], [1], [0, 0, 1, 1], [], []>} : vector<16x128xf32>, vector<128x128xf32>, vector<16x128xf32> -> vector<16x128xf32>
    %c0_9 = arith.constant 0 : index
    %c0_10 = arith.constant 0 : index
    %10 = vector.load %arg5[%c0_9, %c0_10] : memref<1x128xf32, #tpu.memory_space<vmem>>, vector<1x128xf32>
    %11 = vector.broadcast %10 : vector<1x128xf32> to vector<16x128xf32>
    %12 = arith.addf %9, %11 : vector<16x128xf32>
    %cst_11 = arith.constant 0.000000e+00 : f32
    %13 = vector.broadcast %cst_11 : f32 to vector<16x128xf32>
    %14 = arith.maximumf %12, %13 : vector<16x128xf32>
    %c0_12 = arith.constant 0 : index
    %c0_13 = arith.constant 0 : index
    %15 = vector.load %arg6[%c0_12, %c0_13] : memref<128x8xf32, #tpu.memory_space<vmem>>, vector<128x8xf32>
    %cst_14 = arith.constant dense<0.000000e+00> : vector<16x8xf32>
    %16 = tpu.matmul %14, %15, %cst_14 {dimension_numbers = #tpu.dot_dimension_numbers<[1], [0], [0], [1], [0, 0, 1, 1], [], []>} : vector<16x128xf32>, vector<128x8xf32>, vector<16x8xf32> -> vector<16x8xf32>
    %c0_15 = arith.constant 0 : index
    %c0_16 = arith.constant 0 : index
    %17 = vector.load %arg7[%c0_15, %c0_16] : memref<1x8xf32, #tpu.memory_space<vmem>>, vector<1x8xf32>
    %18 = vector.broadcast %17 : vector<1x8xf32> to vector<16x8xf32>
    %19 = arith.addf %16, %18 : vector<16x8xf32>
    %c0_17 = arith.constant 0 : index
    %c0_18 = arith.constant 0 : index
    %20 = vector.load %arg8[%c0_17, %c0_18] : memref<16x8xf32, #tpu.memory_space<vmem>>, vector<16x8xf32>
    tpu.vector_store %arg8[%c0_17, %c0_18], %19 {strides = array<i32>} : memref<16x8xf32, #tpu.memory_space<vmem>>, vector<16x8xf32>,
    return
  }
  func.func @transform_0(%arg0: i32) -> (i32, i32) {
    %c0_i32 = arith.constant 0 : i32
    %c0_i32_0 = arith.constant 0 : i32
    return %arg0, %c0_i32 : i32, i32
  }
  func.func @transform_1(%arg0: i32) -> (i32, i32) {
    %c0_i32 = arith.constant 0 : i32
    %c0_i32_0 = arith.constant 0 : i32
    %c0_i32_1 = arith.constant 0 : i32
    return %c0_i32, %c0_i32_0 : i32, i32
  }
  func.func @transform_2(%arg0: i32) -> (i32, i32) {
    %c0_i32 = arith.constant 0 : i32
    %c0_i32_0 = arith.constant 0 : i32
    %c0_i32_1 = arith.constant 0 : i32
    return %c0_i32, %c0_i32_0 : i32, i32
  }
  func.func @transform_3(%arg0: i32) -> (i32, i32) {
    %c0_i32 = arith.constant 0 : i32
    %c0_i32_0 = arith.constant 0 : i32
    %c0_i32_1 = arith.constant 0 : i32
    return %c0_i32, %c0_i32_0 : i32, i32
  }
  func.func @transform_4(%arg0: i32) -> (i32, i32) {
    %c0_i32 = arith.constant 0 : i32
    %c0_i32_0 = arith.constant 0 : i32
    %c0_i32_1 = arith.constant 0 : i32
    return %c0_i32, %c0_i32_0 : i32, i32
  }
  func.func @transform_5(%arg0: i32) -> (i32, i32) {
    %c0_i32 = arith.constant 0 : i32
    %c0_i32_0 = arith.constant 0 : i32
    %c0_i32_1 = arith.constant 0 : i32
    return %c0_i32, %c0_i32_0 : i32, i32
  }
  func.func @transform_6(%arg0: i32) -> (i32, i32) {
    %c0_i32 = arith.constant 0 : i32
    %c0_i32_0 = arith.constant 0 : i32
    %c0_i32_1 = arith.constant 0 : i32
    return %c0_i32, %c0_i32_0 : i32, i32
  }
  func.func @transform_7(%arg0: i32) -> (i32, i32) {
    %c0_i32 = arith.constant 0 : i32
    %c0_i32_0 = arith.constant 0 : i32
    return %arg0, %c0_i32 : i32, i32
  }
}

</mosaic_0001>

<bundles_post_ra>
// kernel: tpu_custom_call.1
= control target key start
LH: loop header
LB: loop body
LE: loop exit
PB: predicated region body
PF: predicated region fallthrough
CT: control target
= control target key end

     0   :  { %12 = vsyncpa [#allocation3], 0  ;;  %s1421_s0 = inlined_call_operand.vmem [shape: f32[2,768], index: 0, kind: input, shape index: {}]   ;;  %s1422_s1 = inlined_call_operand.hbm [shape: f32[768,128], index: 1, kind: input, shape index: {}]   ;;  %s1423_s2 = inlined_call_operand.vmem [shape: f32[1,128], index: 2, kind: input, shape index: {}]   ;;  %s1424_s3 = inlined_call_operand.vmem [shape: f32[128,128], index: 3, kind: input, shape index: {}]   ;;  %s1425_s4 = inlined_call_operand.vmem [shape: f32[1,128], index: 4, kind: input, shape index: {}]   ;;  %s1426_s5 = inlined_call_operand.vmem [shape: f32[128,8], index: 5, kind: input, shape index: {}]   ;;  %s1427_s6 = inlined_call_operand.vmem [shape: f32[1,8], index: 6, kind: input, shape index: {}]   ;;  %s1428_s7 = inlined_call_operand.hbm [shape: f32[2,8], index: 7, kind: output, shape index: {}]  }
   0x1   :  { %13 = vsyncpa [#allocation4], 0  ;;  %s1195_s24 = smov [#allocation2]   ;;  %s1147_s28 = scalar_lea.hbm %s1422_s1, 12288 }
   0x2   :  { %s21_s25 = sshll.u32 %s1195_s24, 4  ;;  %p1148_p0 = scmp.ne.s32.totalorder %s1422_s1, %s1147_s28  ;;  %s22_s25 = int_to_ptr.vmem [resolvable:$true] %s21_s25 }
   0x3   :  { %p1151_p1 = scmp.lt.u32.totalorder %s1147_s28, %s1422_s1 }
   0x5   :  { %p1153_p2 = pnand %p1151_p1, %p1148_p0 }
   0x7   :  { %1156 = shalt.err (!%p1153_p2)
}
   0x8   :  { %s1157_s10 = scalar_lea.vmem %s22_s25, 12288  ;;  %p1162_p4 = scmp.lt.s32.totalorder %s22_s25, %s22_s25 }
   0x9   :  { %p1158_p3 = scmp.ne.s32.totalorder %s22_s25, %s1157_s10  ;;  %p1163_p5 = scmp.lt.s32.totalorder %s1157_s10, %s1157_s10 }
   0xb   :  { %p1164_p6 = por %p1163_p5, %p1162_p4 }
   0xd   :  { %p1165_p7 = pnand %p1164_p6, %p1158_p3 }
   0xf   :  { %1168 = shalt.err (!%p1165_p7)
}
  0x10   :  { %s1196_s11 = smov 128   ;;  %s1197_s12 = smov 8  }
  0x11   :  { %27 = dma.hbm_to_vmem [thread:$0]  %s1422_s1, 12288, %s22_s25, [#allocation3], %s1196_s11, %s1196_s11, %s1197_s12  }
  0x12   :  { %1191 = dma.done.wait [#allocation3], 12288  }
  0x13   :  { %1192 = vsyncadd [#allocation3], 4294955008  ;;  %v73_v0 = vld [vmem:[#allocation2 + $0x80] sm:$0xff]  ;;  %v74_v1 = vld [vmem:[#allocation2 + $0x88] sm:$0xff]  ;;  %v1198_v51 = vmov 1983009808   ;;  %v183_v53 = vlaneseq }
  0x14   :  { %v57_v2 = vld [vmem:[#allocation2] sm:$0xff]  ;;  %v964_v3 = vpack.c.bf16 %v74_v1, %v73_v0  ;;  %v58_v4 = vld [vmem:[#allocation2 + $0x8] sm:$0xff]  ;;  %v75_v11 = vld [vmem:[#allocation2 + $0x90] sm:$0xff]  ;;  %v181_v52 = vunpack.c.l.s4 %v1198_v51  ;;  %vm721_vm0 = vcmask 64512  }
  0x15   :  { %v105_v5 = vld [vmem:[#allocation2 + $0x180] sm:$0xff]  ;;  %v106_v6 = vld [vmem:[#allocation2 + $0x188] sm:$0xff]  ;;  %v966_v7 = vpack.c.bf16 %v58_v4, %v57_v2  ;;  %v76_v13 = vld [vmem:[#allocation2 + $0x98] sm:$0xff] }
  0x16   :  { %v996_v8 = vpack.c.bf16 %v106_v6, %v105_v5  ;;  %v89_v9 = vld [vmem:[#allocation2 + $0x100] sm:$0xff]  ;;  %v90_v10 = vld [vmem:[#allocation2 + $0x108] sm:$0xff]  ;;  %965 = vmatprep.subr.bf16.mxu0 %v964_v3  ;;  %v59_v14 = vld [vmem:[#allocation2 + $0x10] sm:$0xff]  ;;  %v968_v16 = vpack.c.bf16 %v76_v13, %v75_v11  ;;  %v182_v2 = vunpack.c.0.s8 %v181_v52  ;;  %v184_v3 = vshrl.u32 %v183_v53, 7 }
  0x17   :  { %v998_v12 = vpack.c.bf16 %v90_v10, %v89_v9  ;;  %v60_v15 = vld [vmem:[#allocation2 + $0x18] sm:$0xff]  ;;  %967 = vmatpush3.bf16.msra.mxu0 %v966_v7  ;;  %v107_v18 = vld [vmem:[#allocation2 + $0x190] sm:$0xff]  ;;  %v77_v23 = vld [vmem:[#allocation2 + $0xa0] sm:$0xff] }
  0x18   :  { %997 = vmatprep.subr.bf16.mxu1 %v996_v8  ;;  %v970_v17 = vpack.c.bf16 %v60_v15, %v59_v14  ;;  %v108_v19 = vld [vmem:[#allocation2 + $0x198] sm:$0xff]  ;;  %v91_v20 = vld [vmem:[#allocation2 + $0x110] sm:$0xff]  ;;  %v78_v24 = vld [vmem:[#allocation2 + $0xa8] sm:$0xff]  ;;  %969 = vmatprep.subr.bf16.mxu0 %v968_v16 }
  0x19   :  { %999 = vmatpush3.bf16.msra.mxu1 %v998_v12  ;;  %v1000_v21 = vpack.c.bf16 %v108_v19, %v107_v18  ;;  %v92_v22 = vld [vmem:[#allocation2 + $0x118] sm:$0xff]  ;;  %v972_v26 = vpack.c.bf16 %v78_v24, %v77_v23  ;;  %v61_v27 = vld [vmem:[#allocation2 + $0x20] sm:$0xff]  ;;  %v62_v28 = vld [vmem:[#allocation2 + $0x28] sm:$0xff] }
  0x1a   :  { %v1002_v25 = vpack.c.bf16 %v92_v22, %v91_v20  ;;  %v109_v29 = vld [vmem:[#allocation2 + $0x1a0] sm:$0xff]  ;;  %v110_v30 = vld [vmem:[#allocation2 + $0x1a8] sm:$0xff]  ;;  %v974_v33 = vpack.c.bf16 %v62_v28, %v61_v27  ;;  %v79_v35 = vld [vmem:[#allocation2 + $0xb0] sm:$0xff] }
  0x1b   :  { %1001 = vmatprep.subr.bf16.mxu1 %v1000_v21  ;;  %v93_v31 = vld [vmem:[#allocation2 + $0x120] sm:$0xff]  ;;  %v94_v32 = vld [vmem:[#allocation2 + $0x128] sm:$0xff]  ;;  %971 = vmatpush3.bf16.msra.mxu0 %v970_v17  ;;  %v1004_v34 = vpack.c.bf16 %v110_v30, %v109_v29  ;;  %v80_v36 = vld [vmem:[#allocation2 + $0xb8] sm:$0xff]  ;;  %v1254_v21 = vsub.s32 %v182_v2, %v184_v3 }
  0x1c   :  { %v63_v37 = vld [vmem:[#allocation2 + $0x30] sm:$0xff]  ;;  %973 = vmatprep.subr.bf16.mxu0 %v972_v26  ;;  %v1006_v38 = vpack.c.bf16 %v94_v32, %v93_v31  ;;  %v976_v39 = vpack.c.bf16 %v80_v36, %v79_v35  ;;  %v64_v40 = vld [vmem:[#allocation2 + $0x38] sm:$0xff]  ;;  %v81_v46 = vld [vmem:[#allocation2 + $0xc0] sm:$0xff] }
  0x1d   :  { %1003 = vmatpush3.bf16.msra.mxu1 %v1002_v25  ;;  %v111_v41 = vld [vmem:[#allocation2 + $0x1b0] sm:$0xff]  ;;  %v112_v42 = vld [vmem:[#allocation2 + $0x1b8] sm:$0xff]  ;;  %v82_v47 = vld [vmem:[#allocation2 + $0xc8] sm:$0xff]  ;;  %v978_v48 = vpack.c.bf16 %v64_v40, %v63_v37 }
  0x1e   :  { %1005 = vmatprep.subr.bf16.mxu1 %v1004_v34  ;;  %v1008_v43 = vpack.c.bf16 %v112_v42, %v111_v41  ;;  %v95_v44 = vld [vmem:[#allocation2 + $0x130] sm:$0xff]  ;;  %v96_v45 = vld [vmem:[#allocation2 + $0x138] sm:$0xff]  ;;  %v113_v49 = vld [vmem:[#allocation2 + $0x1c0] sm:$0xff]  ;;  %v980_v55 = vpack.c.bf16 %v82_v47, %v81_v46 }
  0x1f   :  { %975 = vmatpush3.bf16.msra.mxu0 %v974_v33  ;;  %v114_v50 = vld [vmem:[#allocation2 + $0x1c8] sm:$0xff]  ;;  %v1010_v54 = vpack.c.bf16 %v96_v45, %v95_v44  ;;  %v65_v56 = vld [vmem:[#allocation2 + $0x40] sm:$0xff]  ;;  %v83_v61 = vld [vmem:[#allocation2 + $0xd0] sm:$0xff] }
  0x20   :  { %977 = vmatprep.subr.bf16.mxu0 %v976_v39  ;;  %v66_v57 = vld [vmem:[#allocation2 + $0x48] sm:$0xff]  ;;  %v97_v58 = vld [vmem:[#allocation2 + $0x140] sm:$0xff]  ;;  %v1012_v59 = vpack.c.bf16 %v114_v50, %v113_v49  ;;  %v84_v62 = vld [vmem:[#allocation2 + $0xd8] sm:$0xff] }
  0x21   :  { %1007 = vmatpush3.bf16.msra.mxu1 %v1006_v38  ;;  %v98_v60 = vld [vmem:[#allocation2 + $0x148] sm:$0xff]  ;;  %v115_v63 = vld [vmem:[#allocation2 + $0x1d0] sm:$0xff]  ;;  %v116_v0 = vld [vmem:[#allocation2 + $0x1d8] sm:$0xff]  ;;  %v982_v1 = vpack.c.bf16 %v66_v57, %v65_v56  ;;  %v984_v5 = vpack.c.bf16 %v84_v62, %v83_v61 }
  0x22   :  { %1009 = vmatprep.subr.bf16.mxu1 %v1008_v43  ;;  %v1014_v4 = vpack.c.bf16 %v98_v60, %v97_v58  ;;  %v67_v6 = vld [vmem:[#allocation2 + $0x50] sm:$0xff]  ;;  %v68_v7 = vld [vmem:[#allocation2 + $0x58] sm:$0xff]  ;;  %v1016_v9 = vpack.c.bf16 %v116_v0, %v115_v63  ;;  %v85_v11 = vld [vmem:[#allocation2 + $0xe0] sm:$0xff] }
  0x23   :  { %979 = vmatpush3.bf16.msra.mxu0 %v978_v48  ;;  %v99_v8 = vld [vmem:[#allocation2 + $0x150] sm:$0xff]  ;;  %v100_v10 = vld [vmem:[#allocation2 + $0x158] sm:$0xff]  ;;  %v86_v12 = vld [vmem:[#allocation2 + $0xe8] sm:$0xff]  ;;  %v986_v17 = vpack.c.bf16 %v68_v7, %v67_v6 }
  0x24   :  { %981 = vmatprep.subr.bf16.mxu0 %v980_v55  ;;  %v69_v13 = vld [vmem:[#allocation2 + $0x60] sm:$0xff]  ;;  %v70_v14 = vld [vmem:[#allocation2 + $0x68] sm:$0xff]  ;;  %v87_v20 = vld [vmem:[#allocation2 + $0xf0] sm:$0xff]  ;;  %v1018_v22 = vpack.c.bf16 %v100_v10, %v99_v8  ;;  %v988_v23 = vpack.c.bf16 %v86_v12, %v85_v11 }
  0x25   :  { %1011 = vmatpush3.bf16.msra.mxu1 %v1010_v54  ;;  %v117_v15 = vld [vmem:[#allocation2 + $0x1e0] sm:$0xff]  ;;  %v118_v16 = vld [vmem:[#allocation2 + $0x1e8] sm:$0xff]  ;;  %v88_v25 = vld [vmem:[#allocation2 + $0xf8] sm:$0xff]  ;;  %v990_v30 = vpack.c.bf16 %v70_v14, %v69_v13 }
  0x26   :  { %1013 = vmatprep.subr.bf16.mxu1 %v1012_v59  ;;  %v101_v18 = vld [vmem:[#allocation2 + $0x160] sm:$0xff]  ;;  %v102_v19 = vld [vmem:[#allocation2 + $0x168] sm:$0xff]  ;;  %v1020_v24 = vpack.c.bf16 %v118_v16, %v117_v15  ;;  %v119_v28 = vld [vmem:[#allocation2 + $0x1f0] sm:$0xff]  ;;  %v992_v36 = vpack.c.bf16 %v88_v25, %v87_v20 }
  0x27   :  { %983 = vmatpush3.bf16.msra.mxu0 %v982_v1  ;;  %v1131_v26 = vld [vmem:[%s1421_s0] ss:$12 sps:$4 sm:$0xff]   ;;  %v1133_v27 = vld [vmem:[%s1421_s0 + $0x18] ss:$12 sps:$4 sm:$0xff]   ;;  %v1136_v34 = vld [vmem:[%s1421_s0 + $0x1c] ss:$12 sps:$4 sm:$0xff]   ;;  %v1022_v35 = vpack.c.bf16 %v102_v19, %v101_v18 }
  0x28   :  { %985 = vmatprep.subr.bf16.mxu0 %v984_v5  ;;  %v120_v29 = vld [vmem:[#allocation2 + $0x1f8] sm:$0xff]  ;;  %v186_v31 = vrot.slane %v1131_v26, %v1254_v21  ;;  %v200_v32 = vrot.slane %v1133_v27, %v1254_v21  ;;  %v1135_v33 = vld [vmem:[%s1421_s0 + $0x4] ss:$12 sps:$4 sm:$0xff]   ;;  %v138_v44 = vld [vmem:[#allocation2 + $0x288] sm:$0xff]  ;;  %v207_v46 = vrot.slane %v1136_v34, %v1254_v21 }
  0x29   :  { %1015 = vmatpush3.bf16.msra.mxu1 %v1014_v4  ;;  %v71_v37 = vld [vmem:[#allocation2 + $0x70] sm:$0xff]  ;;  %v72_v38 = vld [vmem:[#allocation2 + $0x78] sm:$0xff]  ;;  %v1024_v40 = vpack.c.bf16 %v120_v29, %v119_v28  ;;  %v137_v43 = vld [vmem:[#allocation2 + $0x280] sm:$0xff]  ;;  %v193_v45 = vrot.slane %v1135_v33, %v1254_v21 }
  0x2a   :  { %1017 = vmatprep.subr.bf16.mxu1 %v1016_v9  ;;  %v103_v39 = vld [vmem:[#allocation2 + $0x170] sm:$0xff]  ;;  %v209_v41 = vcombine.high %v186_v31, %v200_v32  ;;  %v104_v42 = vld [vmem:[#allocation2 + $0x178] sm:$0xff]  ;;  %v994_v47 = vpack.c.bf16 %v72_v38, %v71_v37  ;;  %v1028_v50 = vpack.c.bf16 %v138_v44, %v137_v43  ;;  %v121_v51 = vld [vmem:[#allocation2 + $0x200] sm:$0xff]  ;;  %v208_v55 = vcombine.low %v186_v31, %v200_v32 }
  0x2b   :  { %987 = vmatpush3.bf16.msra.mxu0 %v986_v17  ;;  %v211_v48 = vcombine.high %v193_v45, %v207_v46  ;;  %v1026_v49 = vpack.c.bf16 %v104_v42, %v103_v39  ;;  %v122_v52 = vld [vmem:[#allocation2 + $0x208] sm:$0xff]  ;;  %v139_v53 = vld [vmem:[#allocation2 + $0x290] sm:$0xff]  ;;  %v140_v54 = vld [vmem:[#allocation2 + $0x298] sm:$0xff]  ;;  %v210_v57 = vcombine.low %v193_v45, %v207_v46 }
  0x2c   :  { %989 = vmatprep.subr.bf16.mxu0 %v988_v23  ;;  %360 = vmatprep.mubr.f32.mxu0 %v209_v41  ;;  %v1030_v56 = vpack.c.bf16 %v122_v52, %v121_v51  ;;  %v123_v58 = vld [vmem:[#allocation2 + $0x210] sm:$0xff]  ;;  %v124_v59 = vld [vmem:[#allocation2 + $0x218] sm:$0xff]  ;;  %v141_v60 = vld [vmem:[#allocation2 + $0x2a0] sm:$0xff]  ;;  %v1032_v61 = vpack.c.bf16 %v140_v54, %v139_v53 }
  0x2d   :  { %1019 = vmatpush3.bf16.msra.mxu1 %v1018_v22  ;;  %435 = vmatprep.mubr.f32.mxu1 %v211_v48  ;;  %v142_v62 = vld [vmem:[#allocation2 + $0x2a8] sm:$0xff]  ;;  %v1137_v63 = vld [vmem:[%s1421_s0 + $0x30] ss:$12 sps:$4 sm:$0xff]   ;;  %v1141_v1 = vld [vmem:[%s1421_s0 + $0x34] ss:$12 sps:$4 sm:$0xff]   ;;  %v1034_v3 = vpack.c.bf16 %v124_v59, %v123_v58 }
  0x2e   :  { %1021 = vmatprep.subr.bf16.mxu1 %v1020_v24  ;;  %v1139_v0 = vld [vmem:[%s1421_s0 + $0x48] ss:$12 sps:$4 sm:$0xff]   ;;  %v1142_v2 = vld [vmem:[%s1421_s0 + $0x4c] ss:$12 sps:$4 sm:$0xff]   ;;  %v125_v4 = vld [vmem:[#allocation2 + $0x220] sm:$0xff]  ;;  %v240_v7 = vrot.slane %v1137_v63, %v1254_v21  ;;  %v1036_v8 = vpack.c.bf16 %v142_v62, %v141_v60  ;;  %v247_v11 = vrot.slane %v1141_v1, %v1254_v21 }
  0x2f   :  { %991 = vmatpush3.bf16.msra.mxu0 %v990_v30  ;;  %v126_v5 = vld [vmem:[#allocation2 + $0x228] sm:$0xff]  ;;  %v143_v6 = vld [vmem:[#allocation2 + $0x2b0] sm:$0xff]  ;;  %v144_v9 = vld [vmem:[#allocation2 + $0x2b8] sm:$0xff]  ;;  %v254_v10 = vrot.slane %v1139_v0, %v1254_v21  ;;  %v261_v12 = vrot.slane %v1142_v2, %v1254_v21 }
  0x30   :  { %993 = vmatprep.subr.bf16.mxu0 %v992_v36  ;;  %v1143_v13 = vld [vmem:[%s1421_s0 + $0x8] ss:$12 sps:$4 sm:$0xff]   ;;  %v1144_v18 = vld [vmem:[%s1421_s0 + $0x20] ss:$12 sps:$4 sm:$0xff]   ;;  %v1038_v19 = vpack.c.bf16 %v126_v5, %v125_v4  ;;  %v1040_v22 = vpack.c.bf16 %v144_v9, %v143_v6  ;;  %v128_v24 = vld [vmem:[#allocation2 + $0x238] sm:$0xff] }
  0x31   :  { %1023 = vmatpush3.bf16.msra.mxu1 %v1022_v35  ;;  %v263_v14 = vcombine.high %v240_v7, %v254_v10  ;;  %v262_v15 = vcombine.low %v240_v7, %v254_v10  ;;  %v265_v16 = vcombine.high %v247_v11, %v261_v12  ;;  %v264_v17 = vcombine.low %v247_v11, %v261_v12  ;;  %v127_v23 = vld [vmem:[#allocation2 + $0x230] sm:$0xff]  ;;  %v145_v26 = vld [vmem:[#allocation2 + $0x2c0] sm:$0xff]  ;;  %v146_v27 = vld [vmem:[#allocation2 + $0x2c8] sm:$0xff] }
  0x32   :  { %1025 = vmatprep.subr.bf16.mxu1 %v1024_v40  ;;  %v220_v20 = vrot.slane %v1143_v13, %v1254_v21  ;;  %v227_v25 = vrot.slane %v1144_v18, %v1254_v21  ;;  %v1042_v29 = vpack.c.bf16 %v128_v24, %v127_v23  ;;  %v1044_v30 = vpack.c.bf16 %v146_v27, %v145_v26  ;;  %v129_v31 = vld [vmem:[#allocation2 + $0x240] sm:$0xff]  ;;  %v130_v32 = vld [vmem:[#allocation2 + $0x248] sm:$0xff]  ;;  %v147_v33 = vld [vmem:[#allocation2 + $0x2d0] sm:$0xff] }
  0x33   :  { %995 = vmatpush3.bf16.msra.mxu0 %v994_v47  ;;  %v148_v34 = vld [vmem:[#allocation2 + $0x2d8] sm:$0xff]  ;;  %v1046_v35 = vpack.c.bf16 %v130_v32, %v129_v31  ;;  %v131_v37 = vld [vmem:[#allocation2 + $0x250] sm:$0xff]  ;;  %v149_v39 = vld [vmem:[#allocation2 + $0x2e0] sm:$0xff] }
  0x34   :  { %1029 = vmatprep.subr.bf16.mxu0 %v1028_v50  ;;  %v229_v28 = vcombine.high %v220_v20, %v227_v25  ;;  %v1048_v36 = vpack.c.bf16 %v148_v34, %v147_v33  ;;  %v132_v38 = vld [vmem:[#allocation2 + $0x258] sm:$0xff]  ;;  %v150_v40 = vld [vmem:[#allocation2 + $0x2e8] sm:$0xff]  ;;  %v133_v43 = vld [vmem:[#allocation2 + $0x260] sm:$0xff] }
  0x35   :  { %1027 = vmatpush3.bf16.msra.mxu1 %v1026_v49  ;;  %v1050_v41 = vpack.c.bf16 %v132_v38, %v131_v37  ;;  %v1052_v42 = vpack.c.bf16 %v150_v40, %v149_v39  ;;  %v134_v44 = vld [vmem:[#allocation2 + $0x268] sm:$0xff]  ;;  %v151_v45 = vld [vmem:[#allocation2 + $0x2f0] sm:$0xff]  ;;  %v152_v46 = vld [vmem:[#allocation2 + $0x2f8] sm:$0xff] }
  0x36   :  { %361 = vmatmul.mubr.f32.vlgmr.msra.gmra.mrb[0].mxu0 %v208_v55  ;;  %v1054_v47 = vpack.c.bf16 %v134_v44, %v133_v43  ;;  %v1145_v48 = vld [vmem:[%s1421_s0 + $0x38] ss:$12 sps:$4 sm:$0xff]   ;;  %v1146_v49 = vld [vmem:[%s1421_s0 + $0x50] ss:$12 sps:$4 sm:$0xff]   ;;  %v1056_v50 = vpack.c.bf16 %v152_v46, %v151_v45  ;;  %v524_v60 = vld [vmem:[%s1424_s3 + $0x8] sm:$0xff] }
  0x37   :  { %1031 = vmatpush3.bf16.msra.mxu0 %v1030_v56  ;;  %365 = vmatprep.mubr.f32.mxu0 %v263_v14  ;;  %v135_v51 = vld [vmem:[#allocation2 + $0x270] sm:$0xff]  ;;  %v136_v52 = vld [vmem:[#allocation2 + $0x278] sm:$0xff]  ;;  %v274_v54 = vrot.slane %v1145_v48, %v1254_v21  ;;  %v281_v55 = vrot.slane %v1146_v49, %v1254_v21  ;;  %v228_v56 = vcombine.low %v220_v20, %v227_v25  ;;  %v523_v59 = vld [vmem:[%s1424_s3] sm:$0xff] }
  0x38   :  { %436 = vmatmul.mubr.f32.vlgmr.msra.gmra.mrb[0].mxu1 %v210_v57  ;;  %1033 = vmatprep.subr.bf16.mxu0 %v1032_v61  ;;  %v1058_v53 = vpack.c.bf16 %v136_v52, %v135_v51  ;;  %v525_v21 = vld [vmem:[%s1424_s3 + $0x10] sm:$0xff]  ;;  %v1060_v61 = vpack.c.bf16 %v524_v60, %v523_v59  ;;  %v526_v62 = vld [vmem:[%s1424_s3 + $0x18] sm:$0xff]  ;;  %v527_v0 = vld [vmem:[%s1424_s3 + $0x20] sm:$0xff] }
  0x39   :  { %440 = vmatprep.mubr.f32.mxu1 %v265_v16  ;;  %v283_v57 = vcombine.high %v274_v54, %v281_v55  ;;  %v282_v58 = vcombine.low %v274_v54, %v281_v55  ;;  %v1064_v63 = vpack.c.bf16 %v526_v62, %v525_v21  ;;  %v528_v1 = vld [vmem:[%s1424_s3 + $0x28] sm:$0xff]  ;;  %v530_v4 = vld [vmem:[%s1424_s3 + $0x38] sm:$0xff]  ;;  %v531_v6 = vld [vmem:[%s1424_s3 + $0x40] sm:$0xff] }
  0x3a   :  { %366 = vmatmul.mubr.f32.gmra.mrb[2].mxu0 %v262_v15  ;;  %1061 = vmatprep.subr.bf16.mxu1 %v1060_v61  ;;  %v1068_v2 = vpack.c.bf16 %v528_v1, %v527_v0  ;;  %v532_v7 = vld [vmem:[%s1424_s3 + $0x48] sm:$0xff]  ;;  %v533_v9 = vld [vmem:[%s1424_s3 + $0x50] sm:$0xff]  ;;  %v534_v10 = vld [vmem:[%s1424_s3 + $0x58] sm:$0xff] }
  0x3b   :  { %1035 = vmatpush3.bf16.msra.mxu0 %v1034_v3  ;;  %510 = vmatprep.mubr.f32.mxu0 %v229_v28  ;;  %v529_v3 = vld [vmem:[%s1424_s3 + $0x30] sm:$0xff]  ;;  %v1080_v11 = vpack.c.bf16 %v534_v10, %v533_v9  ;;  %v535_v12 = vld [vmem:[%s1424_s3 + $0x60] sm:$0xff]  ;;  %v536_v13 = vld [vmem:[%s1424_s3 + $0x68] sm:$0xff] }
  0x3c   :  { %1037 = vmatprep.subr.bf16.mxu0 %v1036_v8  ;;  %441 = vmatmul.mubr.f32.gmra.mrb[2].mxu1 %v264_v17  ;;  %v1072_v5 = vpack.c.bf16 %v530_v4, %v529_v3  ;;  %v1076_v8 = vpack.c.bf16 %v532_v7, %v531_v6  ;;  %v1084_v14 = vpack.c.bf16 %v536_v13, %v535_v12  ;;  %v537_v15 = vld [vmem:[%s1424_s3 + $0x70] sm:$0xff]  ;;  %v538_v16 = vld [vmem:[%s1424_s3 + $0x78] sm:$0xff]  ;;  %v623_v18 = vld [vmem:[%s1426_s5] sm:$0xff] }
  0x3d   :  { %1063 = vmatpush3.bf16.msra.mxu1 %v1060_v61  ;;  %v1088_v17 = vpack.c.bf16 %v538_v16, %v537_v15  ;;  %v625_v20 = vld [vmem:[%s1426_s5 + $0x10] sm:$0xff]  ;;  %v626_v23 = vld [vmem:[%s1426_s5 + $0x18] sm:$0xff]  ;;  %v627_v25 = vld [vmem:[%s1426_s5 + $0x20] sm:$0xff] }
  0x3e   :  { %1065 = vmatprep.subr.bf16.mxu1 %v1064_v63  ;;  %v1096_v24 = vpack.c.bf16 %v626_v23, %v625_v20  ;;  %v628_v26 = vld [vmem:[%s1426_s5 + $0x28] sm:$0xff]  ;;  %v629_v28 = vld [vmem:[%s1426_s5 + $0x30] sm:$0xff]  ;;  %v631_v31 = vld [vmem:[%s1426_s5 + $0x40] sm:$0xff] }
  0x3f   :  { %1039 = vmatpush3.bf16.msra.mxu0 %v1038_v19  ;;  %v624_v19 = vld [vmem:[%s1426_s5 + $0x8] sm:$0xff]  ;;  %v1100_v27 = vpack.c.bf16 %v628_v26, %v627_v25  ;;  %v633_v34 = vld [vmem:[%s1426_s5 + $0x50] sm:$0xff]  ;;  %v635_v37 = vld [vmem:[%s1426_s5 + $0x60] sm:$0xff] }
  0x40   :  { %1041 = vmatprep.subr.bf16.mxu0 %v1040_v22  ;;  %v1092_v22 = vpack.c.bf16 %v624_v19, %v623_v18  ;;  %v632_v32 = vld [vmem:[%s1426_s5 + $0x48] sm:$0xff]  ;;  %v638_v3 = vld [vmem:[%s1426_s5 + $0x78] sm:$0xff]  ;;  %v743_v12 = vld [vmem:[%s1427_s6] ss:$0 sm:$0xff] }
  0x41   :  { %1067 = vmatpush3.bf16.msra.mxu1 %v1064_v63  ;;  %v1108_v33 = vpack.c.bf16 %v632_v32, %v631_v31  ;;  %v636_v38 = vld [vmem:[%s1426_s5 + $0x68] sm:$0xff] }
  0x42   :  { %1069 = vmatprep.subr.bf16.mxu1 %v1068_v2  ;;  %v1116_v39 = vpack.c.bf16 %v636_v38, %v635_v37 }
  0x43   :  { %1043 = vmatpush3.bf16.msra.mxu0 %v1042_v29  ;;  %v630_v29 = vld [vmem:[%s1426_s5 + $0x38] sm:$0xff] }
  0x44   :  { %1045 = vmatprep.subr.bf16.mxu0 %v1044_v30  ;;  %v1104_v30 = vpack.c.bf16 %v630_v29, %v629_v28 }
  0x45   :  { %1071 = vmatpush3.bf16.msra.mxu1 %v1068_v2  ;;  %v637_v2 = vld [vmem:[%s1426_s5 + $0x70] sm:$0xff] }
  0x46   :  { %1073 = vmatprep.subr.bf16.mxu1 %v1072_v5  ;;  %v1120_v4 = vpack.c.bf16 %v638_v3, %v637_v2 }
  0x47   :  { %1047 = vmatpush3.bf16.msra.mxu0 %v1046_v35  ;;  %v634_v35 = vld [vmem:[%s1426_s5 + $0x58] sm:$0xff] }
  0x48   :  { %1049 = vmatprep.subr.bf16.mxu0 %v1048_v36  ;;  %v1112_v36 = vpack.c.bf16 %v634_v35, %v633_v34 }
  0x49   :  { %1075 = vmatpush3.bf16.msra.mxu1 %v1072_v5  ;;  %v742_v5 = vld [vmem:[%s1425_s4] ss:$0 sm:$0xff] }
  0x4a   :  { %1077 = vmatprep.subr.bf16.mxu1 %v1076_v8 }
  0x4b   :  { %1051 = vmatpush3.bf16.msra.mxu0 %v1050_v41  ;;  %v741_v41 = vld [vmem:[%s1423_s2] ss:$0 sm:$0xff] }
  0x4c   :  { %1053 = vmatprep.subr.bf16.mxu0 %v1052_v42 }
  0x4d   :  { %1079 = vmatpush3.bf16.msra.mxu1 %v1076_v8 }
  0x4e   :  { %1081 = vmatprep.subr.bf16.mxu1 %v1080_v11 }
  0x4f   :  { %1055 = vmatpush3.bf16.msra.mxu0 %v1054_v47 }
  0x50   :  { %1057 = vmatprep.subr.bf16.mxu0 %v1056_v50 }
  0x51   :  { %1083 = vmatpush3.bf16.msra.mxu1 %v1080_v11 }
  0x52   :  { %1085 = vmatprep.subr.bf16.mxu1 %v1084_v14 }
  0x53   :  { %1059 = vmatpush3.bf16.msra.mxu0 %v1058_v53 }
  0x54   :  { %1093 = vmatprep.subr.bf16.mxu0 %v1092_v22 }
  0x55   :  { %1087 = vmatpush3.bf16.msra.mxu1 %v1084_v14 }
  0x56   :  { %511 = vmatmul.mubr.f32.vlgmr.msra.gmra.mrb[4].mxu0 %v228_v56  ;;  %1089 = vmatprep.subr.bf16.mxu1 %v1088_v17 }
  0x57   :  { %515 = vmatprep.mubr.f32.mxu0 %v283_v57  ;;  %1095 = vmatpush3.bf16.msra.mxu0 %v1092_v22 }
  0x58   :  { %1097 = vmatprep.subr.bf16.mxu0 %v1096_v24 }
  0x59   :  { %1091 = vmatpush3.bf16.msra.mxu1 %v1088_v17 }
  0x5a   :  { %516 = vmatmul.mubr.f32.gmra.mrb[6].mxu0 %v282_v58 }
  0x5b   :  { %1099 = vmatpush3.bf16.msra.mxu0 %v1096_v24 }
  0x5c   :  { %1101 = vmatprep.subr.bf16.mxu0 %v1100_v27 }
  0x5f   :  { %1103 = vmatpush3.bf16.msra.mxu0 %v1100_v27 }
  0x60   :  { %1105 = vmatprep.subr.bf16.mxu0 %v1104_v30 }
  0x63   :  { %1107 = vmatpush3.bf16.msra.mxu0 %v1104_v30 }
  0x64   :  { %1109 = vmatprep.subr.bf16.mxu0 %v1108_v33 }
  0x67   :  { %1111 = vmatpush3.bf16.msra.mxu0 %v1108_v33 }
  0x68   :  { %1113 = vmatprep.subr.bf16.mxu0 %v1112_v36 }
  0x6b   :  { %1115 = vmatpush3.bf16.msra.mxu0 %v1112_v36 }
  0x6c   :  { %1117 = vmatprep.subr.bf16.mxu0 %v1116_v39 }
  0x6f   :  { %1119 = vmatpush3.bf16.msra.mxu0 %v1116_v39 }
  0x70   :  { %1121 = vmatprep.subr.bf16.mxu0 %v1120_v4 }
  0x73   :  { %1123 = vmatpush3.bf16.msra.mxu0 %v1120_v4 }
 0x109   :  { %v776_v40 = vpop.f32.mrb[0].mxu0 }
 0x10a   :  { %v777_v42 = vpop.f32.mrb[1].mxu0 }
 0x10b   :  { %v814_v43 = vpop.f32.mrb[0].mxu1  ;;  %v778_v44 = vadd.f32 %v777_v42, %v776_v40 }
 0x10c   :  { %v815_v45 = vpop.f32.mrb[1].mxu1 }
 0x10d   :  { %v816_v46 = vadd.f32 %v815_v45, %v814_v43  ;;  %v363_v47 = vadd.f32 %v778_v44, %v741_v41  ;;  %v779_v49 = vpop.f32.mrb[2].mxu0 }
 0x10e   :  { %v780_v50 = vpop.f32.mrb[3].mxu0 }
 0x10f   :  { %v438_v48 = vadd.f32 %v816_v46, %v363_v47  ;;  %v817_v51 = vpop.f32.mrb[2].mxu1  ;;  %v781_v52 = vadd.f32 %v780_v50, %v779_v49 }
 0x110   :  { %v818_v53 = vpop.f32.mrb[3].mxu1 }
 0x111   :  { %v819_v54 = vadd.f32 %v818_v53, %v817_v51  ;;  %v368_v55 = vadd.f32 %v781_v52, %v741_v41 }
 0x113   :  { %v443_v56 = vadd.f32 %v819_v54, %v368_v55 }
 0x129   :  { %v852_v57 = vpop.f32.mrb[4].mxu0 }
 0x12a   :  { %v853_v58 = vpop.f32.mrb[5].mxu0 }
 0x12b   :  { %v854_v59 = vadd.f32 %v853_v58, %v852_v57 }
 0x12d   :  { %v513_v60 = vadd.f32 %v854_v59, %v438_v48  ;;  %v855_v21 = vpop.f32.mrb[6].mxu0 }
 0x12e   :  { %v856_v61 = vpop.f32.mrb[7].mxu0 }
 0x12f   :  { %v521_v62 = vmax.f32 %v513_v60, 0.0  ;;  %v857_v63 = vadd.f32 %v856_v61, %v855_v21 }
 0x131   :  { %v518_v0 = vadd.f32 %v857_v63, %v443_v56  ;;  %926 = vmatprep.mubr.f32.mxu1 %v521_v62 }
 0x133   :  { %v522_v1 = vmax.f32 %v518_v0, 0.0 }
 0x135   :  { %927 = vmatmul.mubr.f32.vlgmr.msra.gmra.mrb[4].mxu1 %v522_v1 }
 0x208   :  { %v928_v6 = vpop.f32.mrb[4].mxu1 }
 0x209   :  { %v618_v7 = vadd.f32 %v928_v6, %v742_v5  ;;  %v612_v8 = vpop.f32.mrb[5].mxu1 }
 0x20a   :  { %v613_v9 = vadd.f32 %v742_v5, %v612_v8 }
 0x20b   :  { %v622_v11 = vmax.f32 %v618_v7, 0.0 }
 0x20c   :  { %v621_v10 = vmax.f32 %v613_v9, 0.0 }
 0x20e   :  { %961 = vmatprep.mubr.f32.mxu0 %v621_v10 }
 0x20f   :  { %962 = vmatmul.mubr.f32.vlgmr.msra.gmra.mrb[8].mxu0 %v622_v11 }
 0x2e2   :  { %v963_v13 = vpop.f32.mrb[8].mxu0 }
 0x2e3   :  { %v718_v14 = vadd.f32 %v963_v13, %v743_v12  ;;  %v712_v15 = vpop.f32.mrb[9].mxu0 }
 0x2e4   :  { %v713_v16 = vadd.f32 %v743_v12, %v712_v15 }
 0x2e5   :  { %723 = vst.msk [vmem:[#allocation5 + $0x8] sm:$0xff] %vm721_vm0, %v718_v14 }
 0x2e6   :  { %722 = vst.msk [vmem:[#allocation5] sm:$0xff] %vm721_vm0, %v713_v16 }
 0x2e7   :  { %728 = vsyncadd [#allocation4], 224  ;;  %s1199_s4 = smov [#allocation5]  }
 0x2e8   :  { %s729_s5 = sshll.u32 %s1199_s4, 4  ;;  %s730_s5 = int_to_ptr.vmem [resolvable:$true] %s729_s5 }
 0x2e9   :  { %s1169_s30 = scalar_lea.vmem %s730_s5, 32  ;;  %s1173_s8 = scalar_lea.vmem %s730_s5, 256 }
 0x2ea   :  { %p1170_p8 = scmp.ne.s32.totalorder %s730_s5, %s1169_s30  ;;  %p1174_p9 = scmp.lt.s32.totalorder %s730_s5, %s730_s5 }
 0x2eb   :  { %p1175_p10 = scmp.lt.s32.totalorder %s1173_s8, %s1169_s30 }
 0x2ed   :  { %p1176_p11 = por %p1175_p10, %p1174_p9 }
 0x2ef   :  { %p1177_p12 = pnand %p1176_p11, %p1170_p8 }
 0x2f1   :  { %1180 = shalt.err (!%p1177_p12)
}
 0x2f2   :  { %s1181_s10 = scalar_lea.hbm %s1428_s7, 32 }
 0x2f3   :  { %p1182_p13 = scmp.ne.s32.totalorder %s1428_s7, %s1181_s10  ;;  %p1185_p0 = scmp.lt.u32.totalorder %s1181_s10, %s1428_s7 }
 0x2f5   :  { %p1187_p1 = pnand %p1185_p0, %p1182_p13 }
 0x2f7   :  { %1190 = shalt.err (!%p1187_p1)
}
 0x2f8   :  { %s1200_s1 = smov 32   ;;  %s1201_s0 = smov 2  }
 0x2f9   :  { %735 = dma.vmem_to_hbm [thread:$0]  %s730_s5, 32, %s1428_s7, [#allocation4], %s1200_s1, %s1200_s1, %s1201_s0  }
 0x2fa   :  { %1193 = dma.done.wait [#allocation4], 256  }
 0x2fb   :  { %1194 = vsyncadd [#allocation4], 4294967040 }
 0x2fc   :  { %739 = vsyncpa [#allocation3], 1 }
 0x2fd   :  { %740 = vsyncpa [#allocation4], 1 }

</bundles_post_ra>
